<compile_context>
chip_gen: v7x
topology: tpu7x:2x2x1
jax: 0.10.0
libtpu: 0.0.40
codegen_flags: <defaults>
</compile_context>

<pallas_src>
import jax
import jax.numpy as jnp
from jax.experimental import pallas as pl
from jax.experimental.pallas import tpu as pltpu

_MIB = 1024 * 1024


# ----------------------------------------------------------------------------
# Kernel
# ----------------------------------------------------------------------------
def _poisson_loss_kernel(img_ref, filt_ref, time_t_ref, time_aln_ref,
                         mask_ref, bias_ref, spk_ref, out_ref):
    """One (batch-tile, cell-tile) grid step.

    img_ref:      (TB, P)      images (caller dtype; cast to bf16 for the MXU)
    filt_ref:     (P, TC)      spatial filters, bf16, pre-transposed
    time_t_ref:   (Lm1, TC)    precomputed_time_component[:, :-1].T (cells on lanes)
    time_aln_ref: (TC, T)      time component aligned to the RAW spike time axis
    mask_ref:     (1, T)       1.0 where t >= n_bins_filter else 0.0
    bias_ref:     (1, TC)      per-cell biases
    spk_ref:      (TB, TC, T)  raw observed spikes (narrow dtype, unsliced)
    out_ref:      (TB, 1)      per-image summed loss, accumulated over cell tiles
    """
    j = pl.program_id(1)

    # --- spatial filtering on the MXU: (TB, P) @ (P, TC), bf16 in, f32 acc ---
    spat = jnp.dot(img_ref[...].astype(jnp.bfloat16), filt_ref[...],
                   preferred_element_type=jnp.float32)                # (TB, TC)

    # --- exp(gensig) term; cells on the lane dim => lane-dense for C >= 128 ---
    gensig = (spat[:, None, :] * time_t_ref[...][None, :, :]
              + bias_ref[...][None, :, :])                            # (TB, Lm1, TC)
    exp_sum = jnp.sum(jnp.sum(jnp.exp(gensig), axis=-1),
                      axis=-1, keepdims=True)                         # (TB, 1)

    # --- spike term, restructured:  sum_{c,t} spk*gensig
    #       = sum_c [ spat * sum_t(spk*time) + bias * sum_t(spk) ]
    # Spikes keep their native (TB, TC, T) layout; the [n_bins_filter:] slice is
    # folded into time_aln / mask (zeros to the left of the offset).
    spk = spk_ref[...].astype(jnp.float32)                            # (TB, TC, T)
    r1 = jnp.sum(spk * time_aln_ref[...][None, :, :], axis=-1)        # (TB, TC)
    r0 = jnp.sum(spk * mask_ref[...][None, :, :], axis=-1)            # (TB, TC)
    spk_term = jnp.sum(spat * r1 + bias_ref[...] * r0,
                       axis=-1, keepdims=True)                        # (TB, 1)

    tile_loss = exp_sum - spk_term                                    # (TB, 1)

    @pl.when(j == 0)
    def _init():
        out_ref[...] = jnp.zeros_like(out_ref)

    out_ref[...] += tile_loss


# ----------------------------------------------------------------------------
# Tiling heuristics (generation-aware)
# ----------------------------------------------------------------------------
def _vmem_capacity_bytes():
    # 128 MiB on v5e/v6e, 64 MiB per TensorCore on v7x.
    try:
        return int(pltpu.get_tpu_info().vmem_capacity_bytes)
    except Exception:
        return 64 * _MIB  # conservative default (v7x per-core VMEM)


def _pick_batch_tile(B):
    if B <= 16:
        return B                        # single whole-batch tile (== full dim)
    for cand in (64, 32, 16):           # multiples of 16: safe for bf16 sublane packing
        if B % cand == 0:
            return cand
    # TODO(synk): pad the batch to a multiple of 16 instead of falling back to a
    # single batch tile when B is large with no aligned divisor.
    return B


def _estimate_step_vmem(TB, TC, P, T, Lm1, img_bytes, spk_bytes):
    img = TB * P * img_bytes
    filt = P * TC * 2                    # bf16 filters
    time_t = Lm1 * TC * 4
    time_aln = TC * T * 4
    mask = T * 4
    bias = TC * 4
    spk = TB * TC * T * spk_bytes
    out = TB * 4
    gensig = TB * Lm1 * TC * 4           # main in-kernel intermediate
    spk_f32 = TB * TC * T * 4
    # double-buffered streams + resident params + live intermediates (rough)
    return (2 * (img + filt + spk + time_t + time_aln + mask + bias + out)
            + 2 * gensig + spk_f32)


def _pick_cell_tile(TB, C, P, T, Lm1, img_bytes, spk_bytes, budget_bytes):
    cands = []
    if C <= 512:
        cands.append(C)
    cands += [c for c in (512, 384, 256, 128) if c < C and C % c == 0]
    if not cands:
        cands = [C]                      # no 128-aligned divisor -> whole cell axis
    TC = cands[-1]
    for c in cands:
        if _estimate_step_vmem(TB, c, P, T, Lm1, img_bytes, spk_bytes) <= budget_bytes:
            TC = c
            break
    return TC


# ----------------------------------------------------------------------------
# Module
# ----------------------------------------------------------------------------
class BatchFlashedFrameRatePoissonEncodingLossPrecompute:
    """JAX/Pallas port of the PyTorch module (Poisson encoding loss baked in)."""

    def __init__(self, lnp_filters, lnp_timecourse, lnp_biases,
                 stimulus_time_component, spiking_loss_fn_noreduce=None,
                 n_problems: int = 1, dtype=jnp.float32):
        # TODO(synk): an arbitrary spiking_loss_fn_noreduce callable cannot be
        # injected into the kernel; the Poisson NLL (log_input=True,
        # reduction='none', full=False) is implemented directly.
        self.n_problems = n_problems
        self.n_cells, self.height, self.width = lnp_filters.shape
        self.n_pixels = self.height * self.width
        self.n_bins_filter = lnp_timecourse.shape[1]
        self.n_bins_stimulus = stimulus_time_component.shape[0]
        self.n_bins_loss = self.n_bins_stimulus - self.n_bins_filter + 1
        self.n_bins_spikes = self.n_bins_filter + self.n_bins_loss - 1  # == stimulus bins

        self.lnp_filters_flat = jnp.asarray(lnp_filters, dtype).reshape(self.n_cells, -1)
        # Pre-transposed bf16 filters for the MXU (parameter-side, done once).
        self.lnp_filters_t_bf16 = self.lnp_filters_flat.T.astype(jnp.bfloat16)  # (P, C)
        self.lnp_timecourse = jnp.asarray(lnp_timecourse, dtype)
        self.lnp_biases = jnp.asarray(lnp_biases, dtype)
        self.stimulus_time_component = jnp.asarray(stimulus_time_component, dtype)
        self.precomputed_time_component = jnp.zeros(
            (self.n_cells, self.n_bins_loss), jnp.float32)
        self._derive_kernel_constants()

    # -- one-off precompute (glue, plain JAX; vectorized, no Python L-loop) --
    def precompute_time_convolutions(self):
        K, L = self.n_bins_filter, self.n_bins_loss
        # F.conv1d == valid cross-correlation: out[c, t] = sum_k stim[t+k] * tc[c, k]
        idx = jnp.arange(L)[:, None] + jnp.arange(K)[None, :]           # (L, K)
        windows = self.stimulus_time_component[idx]                     # (L, K)
        self.precomputed_time_component = (
            self.lnp_timecourse @ windows.T).astype(jnp.float32)        # (C, L)
        self._derive_kernel_constants()

    def _derive_kernel_constants(self):
        C, T, nbf = self.n_cells, self.n_bins_spikes, self.n_bins_filter
        Lm1 = self.n_bins_loss - 1
        time = self.precomputed_time_component                          # (C, L)
        # Transposed time component (cells on lanes) for the exp(gensig) pass.
        self.time_t = time[:, :Lm1].T.astype(jnp.float32)                # (Lm1, C)
        # Spike-side weights aligned to the RAW spike time axis: folds the
        # [:, :, n_bins_filter:] slice into the kernel (zeros left of the offset).
        self.time_aligned = jnp.zeros((C, T), jnp.float32).at[:, nbf:].set(
            time[:, :Lm1])                                               # (C, T)
        self.spk_mask = (jnp.arange(T) >= nbf).astype(jnp.float32)[None, :]  # (1, T)
        self.bias_2d = self.lnp_biases.astype(jnp.float32)[None, :]          # (1, C)

    # -- forward --
    def __call__(self, batched_images, batched_observed_spikes):
        B = batched_images.shape[0]
        C, P, T = self.n_cells, self.n_pixels, self.n_bins_spikes
        Lm1 = self.n_bins_loss - 1
        assert batched_observed_spikes.shape == (B, C, T), (
            batched_observed_spikes.shape, (B, C, T))

        img = batched_images.reshape(B, P)       # streamed as given; bf16 cast in-kernel
        spk = batched_observed_spikes            # native/narrow dtype, unsliced, uncast

        vmem_cap = _vmem_capacity_bytes()
        budget = int(0.5 * vmem_cap)
        TB = _pick_batch_tile(B)
        TC = _pick_cell_tile(TB, C, P, T, Lm1, img.dtype.itemsize,
                             spk.dtype.itemsize, budget)
        est = _estimate_step_vmem(TB, TC, P, T, Lm1, img.dtype.itemsize,
                                  spk.dtype.itemsize)
        vmem_limit = int(min(vmem_cap - 4 * _MIB, max(48 * _MIB, 2 * est)))

        grid = (B // TB, C // TC)
        n_batch_tiles = grid[0]

        flops = 2 * B * P * C + 7 * B * C * Lm1
        bytes_accessed = int(
            spk.size * spk.dtype.itemsize
            + img.size * img.dtype.itemsize
            + n_batch_tiles * (self.lnp_filters_t_bf16.size * 2
                               + self.time_t.size * 4 + self.time_aligned.size * 4)
            + B * 4)

        out = pl.pallas_call(
            _poisson_loss_kernel,
            out_shape=jax.ShapeDtypeStruct((B, 1), jnp.float32),
            grid_spec=pltpu.PrefetchScalarGridSpec(
                num_scalar_prefetch=0,
                grid=grid,
                in_specs=[
                    pl.BlockSpec((TB, P), lambda i, j: (i, 0)),        # images
                    pl.BlockSpec((P, TC), lambda i, j: (0, j)),        # filters (bf16)
                    pl.BlockSpec((Lm1, TC), lambda i, j: (0, j)),      # time_t
                    pl.BlockSpec((TC, T), lambda i, j: (j, 0)),        # time_aligned
                    pl.BlockSpec((1, T), lambda i, j: (0, 0)),         # spike mask
                    pl.BlockSpec((1, TC), lambda i, j: (0, j)),        # biases
                    pl.BlockSpec((TB, TC, T), lambda i, j: (i, j, 0)), # spikes (raw)
                ],
                out_specs=pl.BlockSpec((TB, 1), lambda i, j: (i, 0)),
            ),
            compiler_params=pltpu.CompilerParams(
                dimension_semantics=("parallel", "arbitrary"),
                vmem_limit_bytes=vmem_limit),
            cost_estimate=pl.CostEstimate(
                flops=flops, transcendentals=B * C * Lm1,
                bytes_accessed=bytes_accessed),
        )(img, self.lnp_filters_t_bf16, self.time_t, self.time_aligned,
          self.spk_mask, self.bias_2d, spk)
        return out[:, 0]  # (batch,)


# ----------------------------------------------------------------------------
# Pure-JAX reference (mirrors the PyTorch forward exactly, full f32)
# ----------------------------------------------------------------------------
def _reference_forward(module, batched_images, batched_observed_spikes):
    B = batched_images.shape[0]
    img_flat = batched_images.reshape(B, -1).astype(jnp.float32)
    spat = img_flat @ module.lnp_filters_flat.T                          # (B, C)
    gensig = (spat[:, :, None] * module.precomputed_time_component[None, :, :]
              + module.lnp_biases[None, :, None])                        # (B, C, L)
    g = gensig[:, :, :-1]
    s = batched_observed_spikes[:, :, module.n_bins_filter:].astype(jnp.float32)
    loss = jnp.exp(g) - s * g
    return jnp.sum(loss, axis=(1, 2))


if __name__ == "__main__":
    # Small, deterministic shapes consistent with the module's forward.
    batch = 2
    n_cells = 8
    height = width = 16
    n_bins_filter = 4
    n_bins_total = 35                                  # len(stimulus_time_component)
    n_bins_loss = n_bins_total - n_bins_filter + 1     # 32

    key = jax.random.PRNGKey(0)
    k1, k2, k3, k4, k5, k6 = jax.random.split(key, 6)

    lnp_filters = 0.05 * jax.random.normal(k1, (n_cells, height, width), jnp.float32)
    lnp_timecourse = 0.2 * jax.random.normal(k2, (n_cells, n_bins_filter), jnp.float32)
    lnp_biases = 0.1 * jax.random.normal(k3, (n_cells,), jnp.float32)
    stimulus_time_component = jax.random.normal(k4, (n_bins_total,), jnp.float32)

    batched_images = jax.random.uniform(k5, (batch, height, width), jnp.float32)
    # Spikes kept in a narrow dtype (bf16 holds small counts exactly) and passed
    # to the module unsliced / uncast — the kernel handles both.
    batched_observed_spikes = jax.random.poisson(
        k6, 1.0, (batch, n_cells, n_bins_total)).astype(jnp.bfloat16)

    module = BatchFlashedFrameRatePoissonEncodingLossPrecompute(
        lnp_filters, lnp_timecourse, lnp_biases, stimulus_time_component)
    module.precompute_time_convolutions()

    out = module(batched_images, batched_observed_spikes)
    out = jax.block_until_ready(out)

    ref = _reference_forward(module, batched_images, batched_observed_spikes)
    assert out.shape == (batch,)
    # Tolerance accounts for the bf16 MXU matmul inputs (reference is full f32);
    # observed deviation is ~1e-4 relative, well inside these bounds.
    assert jnp.allclose(out, ref, rtol=5e-3, atol=5e-2), (out, ref)

    print("KERNEL_OK")
</pallas_src>

<mosaic_0001>
module attributes {stable_mosaic.version = 11 : i64} {
  func.func @_poisson_loss_kernel(%arg0: i32, %arg1: i32, %arg2: memref<2x256xf32, #tpu.memory_space<vmem>>, %arg3: memref<256x8xbf16, #tpu.memory_space<vmem>>, %arg4: memref<31x8xf32, #tpu.memory_space<vmem>>, %arg5: memref<8x35xf32, #tpu.memory_space<vmem>>, %arg6: memref<1x35xf32, #tpu.memory_space<vmem>>, %arg7: memref<1x8xf32, #tpu.memory_space<vmem>>, %arg8: memref<2x8x35xbf16, #tpu.memory_space<vmem>>, %arg9: memref<2x1xf32, #tpu.memory_space<vmem>>) attributes {dimension_semantics = [#tpu.dimension_semantics<parallel>, #tpu.dimension_semantics<arbitrary>], iteration_bounds = array<i64: 1, 1>, scalar_prefetch = 0 : i64, scratch_operands = 0 : i64, tpu.core_type = #tpu.core_type<tc>, window_params = [{transform_indices = @transform_0, window_bounds = array<i64: 2, 256>}, {transform_indices = @transform_1, window_bounds = array<i64: 256, 8>}, {transform_indices = @transform_2, window_bounds = array<i64: 31, 8>}, {transform_indices = @transform_3, window_bounds = array<i64: 8, 35>}, {pipeline_mode = #tpu.pipeline_mode<synchronous>, transform_indices = @transform_4, window_bounds = array<i64: 1, 35>}, {transform_indices = @transform_5, window_bounds = array<i64: 1, 8>}, {transform_indices = @transform_6, window_bounds = array<i64: 2, 8, 35>}, {transform_indices = @transform_7, window_bounds = array<i64: 2, 1>}]} {
    %c0 = arith.constant 0 : index
    %c0_0 = arith.constant 0 : index
    %0 = vector.load %arg2[%c0, %c0_0] : memref<2x256xf32, #tpu.memory_space<vmem>>, vector<2x256xf32>
    %1 = arith.truncf %0 : vector<2x256xf32> to vector<2x256xbf16>
    %c0_1 = arith.constant 0 : index
    %c0_2 = arith.constant 0 : index
    %2 = vector.load %arg3[%c0_1, %c0_2] : memref<256x8xbf16, #tpu.memory_space<vmem>>, vector<256x8xbf16>
    %cst = arith.constant dense<0.000000e+00> : vector<2x8xf32>
    %3 = tpu.matmul %1, %2, %cst {dimension_numbers = #tpu.dot_dimension_numbers<[1], [0], [0], [1], [0, 0, 1, 1], [], []>} : vector<2x256xbf16>, vector<256x8xbf16>, vector<2x8xf32> -> vector<2x8xf32>
    %4 = vector.shape_cast %3 : vector<2x8xf32> to vector<2x1x8xf32>
    %c0_3 = arith.constant 0 : index
    %c0_4 = arith.constant 0 : index
    %5 = vector.load %arg4[%c0_3, %c0_4] : memref<31x8xf32, #tpu.memory_space<vmem>>, vector<31x8xf32>
    %6 = vector.shape_cast %5 : vector<31x8xf32> to vector<1x31x8xf32>
    %7 = vector.broadcast %4 : vector<2x1x8xf32> to vector<2x31x8xf32>
    %8 = vector.broadcast %6 : vector<1x31x8xf32> to vector<2x31x8xf32>
    %9 = arith.mulf %7, %8 : vector<2x31x8xf32>
    %c0_5 = arith.constant 0 : index
    %c0_6 = arith.constant 0 : index
    %10 = vector.load %arg7[%c0_5, %c0_6] : memref<1x8xf32, #tpu.memory_space<vmem>>, vector<1x8xf32>
    %11 = vector.shape_cast %10 : vector<1x8xf32> to vector<1x1x8xf32>
    %12 = vector.broadcast %11 : vector<1x1x8xf32> to vector<2x31x8xf32>
    %13 = arith.addf %9, %12 : vector<2x31x8xf32>
    %14 = math.exp %13 : vector<2x31x8xf32>
    %cst_7 = arith.constant dense<0.000000e+00> : vector<2x31xf32>
    %15 = vector.multi_reduction <add>, %14, %cst_7 [2] : vector<2x31x8xf32> to vector<2x31xf32>
    %cst_8 = arith.constant dense<0.000000e+00> : vector<2xf32>
    %16 = vector.multi_reduction <add>, %15, %cst_8 [1] : vector<2x31xf32> to vector<2xf32>
    %17 = vector.shape_cast %16 : vector<2xf32> to vector<2x1xf32>
    %c0_9 = arith.constant 0 : index
    %c0_10 = arith.constant 0 : index
    %c0_11 = arith.constant 0 : index
    %18 = vector.load %arg8[%c0_9, %c0_10, %c0_11] : memref<2x8x35xbf16, #tpu.memory_space<vmem>>, vector<2x8x35xbf16>
    %19 = arith.extf %18 : vector<2x8x35xbf16> to vector<2x8x35xf32>
    %c0_12 = arith.constant 0 : index
    %c0_13 = arith.constant 0 : index
    %20 = vector.load %arg5[%c0_12, %c0_13] : memref<8x35xf32, #tpu.memory_space<vmem>>, vector<8x35xf32>
    %21 = vector.shape_cast %20 : vector<8x35xf32> to vector<1x8x35xf32>
    %22 = vector.broadcast %21 : vector<1x8x35xf32> to vector<2x8x35xf32>
    %23 = arith.mulf %19, %22 : vector<2x8x35xf32>
    %cst_14 = arith.constant dense<0.000000e+00> : vector<2x8xf32>
    %24 = vector.multi_reduction <add>, %23, %cst_14 [2] : vector<2x8x35xf32> to vector<2x8xf32>
    %c0_15 = arith.constant 0 : index
    %c0_16 = arith.constant 0 : index
    %25 = vector.load %arg6[%c0_15, %c0_16] : memref<1x35xf32, #tpu.memory_space<vmem>>, vector<1x35xf32>
    %26 = vector.shape_cast %25 : vector<1x35xf32> to vector<1x1x35xf32>
    %27 = vector.broadcast %26 : vector<1x1x35xf32> to vector<2x8x35xf32>
    %28 = arith.mulf %19, %27 : vector<2x8x35xf32>
    %cst_17 = arith.constant dense<0.000000e+00> : vector<2x8xf32>
    %29 = vector.multi_reduction <add>, %28, %cst_17 [2] : vector<2x8x35xf32> to vector<2x8xf32>
    %30 = arith.mulf %3, %24 : vector<2x8xf32>
    %c0_18 = arith.constant 0 : index
    %c0_19 = arith.constant 0 : index
    %31 = vector.load %arg7[%c0_18, %c0_19] : memref<1x8xf32, #tpu.memory_space<vmem>>, vector<1x8xf32>
    %32 = vector.broadcast %31 : vector<1x8xf32> to vector<2x8xf32>
    %33 = arith.mulf %32, %29 : vector<2x8xf32>
    %34 = arith.addf %30, %33 : vector<2x8xf32>
    %cst_20 = arith.constant dense<0.000000e+00> : vector<2xf32>
    %35 = vector.multi_reduction <add>, %34, %cst_20 [1] : vector<2x8xf32> to vector<2xf32>
    %36 = vector.shape_cast %35 : vector<2xf32> to vector<2x1xf32>
    %37 = arith.subf %17, %36 : vector<2x1xf32>
    %c0_i32 = arith.constant 0 : i32
    %38 = arith.cmpi eq, %arg1, %c0_i32 : i32
    %39 = arith.extui %38 : i1 to i32
    %c0_i32_21 = arith.constant 0 : i32
    %40 = arith.cmpi ne, %39, %c0_i32_21 : i32
    scf.if %40 {
      %cst_26 = arith.constant 0.000000e+00 : f32
      %44 = vector.broadcast %cst_26 : f32 to vector<2x1xf32>
      %c0_27 = arith.constant 0 : index
      %c0_28 = arith.constant 0 : index
      %45 = vector.load %arg9[%c0_27, %c0_28] : memref<2x1xf32, #tpu.memory_space<vmem>>, vector<2x1xf32>
      tpu.vector_store %arg9[%c0_27, %c0_28], %44 {strides = array<i32>} : memref<2x1xf32, #tpu.memory_space<vmem>>, vector<2x1xf32>,
    } else {
    }
    %c0_22 = arith.constant 0 : index
    %c0_23 = arith.constant 0 : index
    %41 = vector.load %arg9[%c0_22, %c0_23] : memref<2x1xf32, #tpu.memory_space<vmem>>, vector<2x1xf32>
    %42 = arith.addf %41, %37 : vector<2x1xf32>
    %c0_24 = arith.constant 0 : index
    %c0_25 = arith.constant 0 : index
    %43 = vector.load %arg9[%c0_24, %c0_25] : memref<2x1xf32, #tpu.memory_space<vmem>>, vector<2x1xf32>
    tpu.vector_store %arg9[%c0_24, %c0_25], %42 {strides = array<i32>} : memref<2x1xf32, #tpu.memory_space<vmem>>, vector<2x1xf32>,
    return
  }
  func.func @transform_0(%arg0: i32, %arg1: i32) -> (i32, i32) {
    %c0_i32 = arith.constant 0 : i32
    %c0_i32_0 = arith.constant 0 : i32
    return %arg0, %c0_i32 : i32, i32
  }
  func.func @transform_1(%arg0: i32, %arg1: i32) -> (i32, i32) {
    %c0_i32 = arith.constant 0 : i32
    %c0_i32_0 = arith.constant 0 : i32
    return %c0_i32, %arg1 : i32, i32
  }
  func.func @transform_2(%arg0: i32, %arg1: i32) -> (i32, i32) {
    %c0_i32 = arith.constant 0 : i32
    %c0_i32_0 = arith.constant 0 : i32
    return %c0_i32, %arg1 : i32, i32
  }
  func.func @transform_3(%arg0: i32, %arg1: i32) -> (i32, i32) {
    %c0_i32 = arith.constant 0 : i32
    %c0_i32_0 = arith.constant 0 : i32
    return %arg1, %c0_i32 : i32, i32
  }
  func.func @transform_4(%arg0: i32, %arg1: i32) -> (i32, i32) {
    %c0_i32 = arith.constant 0 : i32
    %c0_i32_0 = arith.constant 0 : i32
    %c0_i32_1 = arith.constant 0 : i32
    return %c0_i32, %c0_i32_0 : i32, i32
  }
  func.func @transform_5(%arg0: i32, %arg1: i32) -> (i32, i32) {
    %c0_i32 = arith.constant 0 : i32
    %c0_i32_0 = arith.constant 0 : i32
    return %c0_i32, %arg1 : i32, i32
  }
  func.func @transform_6(%arg0: i32, %arg1: i32) -> (i32, i32, i32) {
    %c0_i32 = arith.constant 0 : i32
    %c0_i32_0 = arith.constant 0 : i32
    return %arg0, %arg1, %c0_i32 : i32, i32, i32
  }
  func.func @transform_7(%arg0: i32, %arg1: i32) -> (i32, i32) {
    %c0_i32 = arith.constant 0 : i32
    %c0_i32_0 = arith.constant 0 : i32
    return %arg0, %c0_i32 : i32, i32
  }
}

</mosaic_0001>

<bundles_post_ra>
// kernel: tpu_custom_call.1
= control target key start
LH: loop header
LB: loop body
LE: loop exit
PB: predicated region body
PF: predicated region fallthrough
CT: control target
= control target key end

     0   :  { %vm379_vm0 = vcmask 285696   ;;  %v526_v33 = vmov 1966171168   ;;  %v213_v35 = vlaneseq  ;;  %vm285_vm1 = vcmask 64512   ;;  %s693_s1 = inlined_call_operand.vmem [shape: bf16[256,8], index: 1, kind: input, shape index: {}]   ;;  %s694_s0 = inlined_call_operand.vmem [shape: f32[2,256], index: 0, kind: input, shape index: {}]   ;;  %s695_s6 = inlined_call_operand.vmem [shape: bf16[2,8,35], index: 6, kind: input, shape index: {}]   ;;  %s696_s3 = inlined_call_operand.vmem [shape: f32[8,35], index: 3, kind: input, shape index: {}]   ;;  %s697_s4 = inlined_call_operand.vmem [shape: f32[1,35], index: 4, kind: input, shape index: {}]   ;;  %s698_s2 = inlined_call_operand.vmem [shape: f32[31,8], index: 2, kind: input, shape index: {}]   ;;  %s699_s5 = inlined_call_operand.vmem [shape: f32[1,8], index: 5, kind: input, shape index: {}]   ;;  %s700_s7 = inlined_call_operand.vmem [shape: f32[2,1], index: 7, kind: output, shape index: {}]  }
   0x1   :  { %v494_v0 = vld [vmem:[%s693_s1 + $0x40] sm:$0xff]   ;;  %v496_v2 = vld [vmem:[%s693_s1 + $0x48] sm:$0xff]   ;;  %v498_v4 = vld [vmem:[%s693_s1 + $0x50] sm:$0xff]   ;;  %v211_v34 = vunpack.c.l.s4 %v526_v33  ;;  %vm365_vm2 = vcmask 1041409   ;;  %vm295_vm3 = vcmask 63488   ;;  %vm428_vm4 = vcmask 58368  }
   0x2   :  { %v495_v1 = vld [vmem:[%s693_s1] sm:$0xff]   ;;  %470 = vmatprep.subr.bf16.mxu0 %v494_v0  ;;  %v497_v3 = vld [vmem:[%s693_s1 + $0x8] sm:$0xff]   ;;  %v499_v5 = vld [vmem:[%s693_s1 + $0x10] sm:$0xff]   ;;  %v632_v37 = vshrl.u32 %v213_v35, 7  ;;  %vm437_vm5 = vcmask 1024   ;;  %vm330_vm6 = vcmask 130112  }
   0x3   :  { %471 = vmatpush3.bf16.msra.mxu0 %v495_v1  ;;  %v500_v6 = vld [vmem:[%s693_s1 + $0x58] sm:$0xff]   ;;  %v502_v8 = vld [vmem:[%s693_s1 + $0x60] sm:$0xff]   ;;  %v504_v10 = vld [vmem:[%s693_s1 + $0x68] sm:$0xff]   ;;  %v212_v36 = vunpack.c.0.s8 %v211_v34  ;;  %vm337_vm7 = vcmask 195712   ;;  %vm344_vm8 = vcmask 261312   ;;  %vm368_vm9 = vcmask 246784  }
   0x4   :  { %472 = vmatprep.subr.bf16.mxu0 %v496_v2  ;;  %v501_v7 = vld [vmem:[%s693_s1 + $0x18] sm:$0xff]   ;;  %v503_v9 = vld [vmem:[%s693_s1 + $0x20] sm:$0xff]   ;;  %v505_v18 = vld [vmem:[%s693_s1 + $0x28] sm:$0xff]   ;;  %v238_v45 = vsub.s32 0, %v632_v37 }
   0x5   :  { %v447_v11 = vld.sshfl [vmem:[%s694_s0] sm:$0x33 pattern:$0x76325410]  ;;  %v506_v23 = vld [vmem:[%s693_s1 + $0x70] sm:$0xff]   ;;  %v508_v30 = vld [vmem:[%s693_s1 + $0x78] sm:$0xff]   ;;  %v215_v39 = vsub.s32 %v212_v36, %v632_v37 }
   0x6   :  { %v467_v12 = vld [vmem:[%s695_s6] sm:$0xff]   ;;  %v36_v14 = vcombine.high %v447_v11, %v447_v11  ;;  %v507_v27 = vld [vmem:[%s693_s1 + $0x30] sm:$0xff]   ;;  %v509_v31 = vld [vmem:[%s693_s1 + $0x38] sm:$0xff]   ;;  %v39_v32 = vpack.c.bf16 %v447_v11, %v447_v11 }
   0x7   :  { %473 = vmatpush3.bf16.msra.mxu0 %v497_v3  ;;  %v376_v13 = vld [vmem:[%s696_s3] sm:$0xff]  ;;  %v468_v15 = vunpack.c.l.bf16 %v467_v12  ;;  %v469_v17 = vunpack.c.h.bf16 %v467_v12  ;;  %v233_v48 = vld [vmem:[%s698_s2 + $0x8] sm:$0xff]  ;;  %v234_v50 = vld [vmem:[%s698_s2 + $0x10] sm:$0xff]  ;;  %v654_v12 = vand.u32 127, %v213_v35 }
   0x8   :  { %474 = vmatprep.subr.bf16.mxu0 %v498_v4  ;;  %v465_v16 = vld [vmem:[%s697_s4] ss:$0 sm:$0xff]  ;;  %v40_v19 = vpack.c.bf16 %v36_v14, %v36_v14  ;;  %v235_v62 = vld [vmem:[%s698_s2 + $0x18] sm:$0x7f] }
   0x9   :  { %v393_v20 = vmul.f32 %v468_v15, %v465_v16  ;;  %v377_v21 = vmul.f32 %v468_v15, %v376_v13  ;;  %v394_v22 = vmul.f32 %v469_v17, %v465_v16  ;;  %v378_v24 = vmul.f32 %v469_v17, %v376_v13  ;;  %v232_v49 = vld [vmem:[%s698_s2] sm:$0xff] }
   0xa   :  { %201 = vmatprep.mubr.bf16.mxu0 %v40_v19  ;;  %v464_v57 = vld [vmem:[%s699_s5] ss:$0 sm:$0xff] }
   0xb   :  { %475 = vmatpush3.bf16.msra.mxu0 %v499_v5  ;;  %v395_v25 = vsel %vm379_vm0, %v393_v20, 0.0  ;;  %v380_v26 = vsel %vm379_vm0, %v377_v21, 0.0  ;;  %v398_v28 = vsel %vm379_vm0, %v394_v22, 0.0  ;;  %v383_v29 = vsel %vm379_vm0, %v378_v24, 0.0 }
   0xc   :  { %476 = vmatprep.subr.bf16.mxu0 %v500_v6  ;;  %396 = vadd.xlane.f32.xlu1 %v395_v25 }
   0xd   :  { %381 = vadd.xlane.f32.xlu0 %v380_v26 }
   0xf   :  { %477 = vmatpush3.bf16.msra.mxu0 %v501_v7 }
  0x10   :  { %478 = vmatprep.subr.bf16.mxu0 %v502_v8  ;;  %399 = vadd.xlane.f32.xlu1 %v398_v28 }
  0x11   :  { %384 = vadd.xlane.f32.xlu0 %v383_v29 }
  0x13   :  { %479 = vmatpush3.bf16.msra.mxu0 %v503_v9 }
  0x14   :  { %480 = vmatprep.subr.bf16.mxu0 %v504_v10 }
  0x17   :  { %481 = vmatpush3.bf16.msra.mxu0 %v505_v18  ;;  %v658_v18 = vsub.s32 %v654_v12, %v632_v37 }
  0x18   :  { %482 = vmatprep.subr.bf16.mxu0 %v506_v23 }
  0x1b   :  { %483 = vmatpush3.bf16.msra.mxu0 %v507_v27 }
  0x1c   :  { %484 = vmatprep.subr.bf16.mxu0 %v508_v30 }
  0x1f   :  { %485 = vmatpush3.bf16.msra.mxu0 %v509_v31 }
  0x22   :  { %202 = vmatmul.mubr.bf16.vlgmr.msra.gmra.mrb[0].mxu0 %v39_v32 }
  0x99   :  { %v397_v13 = vpop.xlane.xlu1 %396 }
  0x9a   :  { %v382_v14 = vpop.xlane.xlu0 %381  ;;  %v419_v24 = vrot.slane %v397_v13, %v658_v18 }
  0x9b   :  { %v406_v27 = vrot.slane %v382_v14, %v658_v18 }
  0x9d   :  { %v400_v20 = vpop.xlane.xlu1 %399 }
  0x9e   :  { %v385_v21 = vpop.xlane.xlu0 %384  ;;  %v423_v28 = vrot.slane %v400_v20, %v658_v18 }
  0x9f   :  { %v410_v29 = vrot.slane %v385_v21, %v658_v18 }
  0xa0   :  { %v424_v34 = vsel %vm365_vm2, %v423_v28, %v419_v24 }
  0xa1   :  { %v411_v35 = vsel %vm365_vm2, %v410_v29, %v406_v27 }
  0xf5   :  { %v486_v38 = vpop.f32.mrb[0].mxu0 }
  0xf6   :  { %v487_v40 = vpop.f32.mrb[1].mxu0 }
  0xf7   :  { %v635_v41 = vadd.f32 %v487_v40, %v486_v38  ;;  %v489_v42 = vpop.f32.mrb[2].mxu0 }
  0xf8   :  { %v490_v43 = vpop.f32.mrb[3].mxu0  ;;  %v426_v42 = vmul.f32 %v464_v57, %v424_v34 }
  0xf9   :  { %v216_v44 = vrot.slane %v635_v41, %v215_v39 }
  0xfb   :  { %v217_v46 = vcombine.high %v216_v44, %v216_v44  ;;  %v224_v47 = vrot.slane %v216_v44, %v215_v39 }
  0xfd   :  { %v231_v51 = vrot.slane %v217_v46, %v215_v39  ;;  %v239_v52 = vrot.slane %v224_v47, %v238_v45  ;;  %v413_v39 = vmul.f32 %v635_v41, %v411_v35  ;;  %v527_v41 = vmov 0.0  }
  0xfe   :  { %438 = vst.msk [vmem:[%s700_s7] sm:$0x3] %vm437_vm5, %v527_v41 }
  0xff   :  { %v243_v53 = vrot.slane %v231_v51, %v238_v45  ;;  %v247_v54 = vmul.f32 %v239_v52, %v233_v48  ;;  %v246_v55 = vmul.f32 %v239_v52, %v232_v49  ;;  %v248_v56 = vmul.f32 %v239_v52, %v234_v50 }
 0x100   :  { %v249_v8 = vmul.f32 %v239_v52, %v235_v62  ;;  %v427_v47 = vadd.f32 %v426_v42, %v413_v39  ;;  %v325_v51 = vadd.s32 4294967288, %v654_v12 }
 0x101   :  { %v262_v58 = vadd.f32 %v464_v57, %v247_v54  ;;  %v261_v59 = vadd.f32 %v464_v57, %v246_v55  ;;  %v263_v60 = vadd.f32 %v464_v57, %v248_v56  ;;  %v251_v61 = vmul.f32 %v243_v53, %v233_v48 }
 0x102   :  { %v252_v63 = vmul.f32 %v243_v53, %v234_v50  ;;  %v250_v0 = vmul.f32 %v243_v53, %v232_v49  ;;  %v253_v1 = vmul.f32 %v243_v53, %v235_v62  ;;  %v264_v16 = vadd.f32 %v464_v57, %v249_v8 }
 0x103   :  { %v271_v2 = vmul.f32 1.442695, %v262_v58  ;;  %v269_v3 = vmul.f32 1.442695, %v261_v59  ;;  %v273_v4 = vmul.f32 1.442695, %v263_v60  ;;  %v266_v5 = vadd.f32 %v464_v57, %v251_v61 }
 0x104   :  { %v267_v6 = vadd.f32 %v464_v57, %v252_v63  ;;  %v265_v7 = vadd.f32 %v464_v57, %v250_v0  ;;  %v268_v11 = vadd.f32 %v464_v57, %v253_v1  ;;  %v275_v19 = vmul.f32 1.442695, %v264_v16 }
 0x105   :  { %510 = vpow2.f32 %v271_v2  ;;  %v279_v9 = vmul.f32 1.442695, %v266_v5  ;;  %v429_v49 = vsel %vm428_vm4, %v427_v47, 0.0  ;;  %v332_v53 = vadd.s32 4294967280, %v654_v12  ;;  %v439_v16 = vld [vmem:[%s700_s7] sm:$0x3] }
 0x106   :  { %512 = vpow2.f32 %v269_v3  ;;  %v281_v10 = vmul.f32 1.442695, %v267_v6  ;;  %v277_v15 = vmul.f32 1.442695, %v265_v7  ;;  %v283_v17 = vmul.f32 1.442695, %v268_v11 }
 0x107   :  { %514 = vpow2.f32 %v273_v4  ;;  %v328_v55 = vsub.s32 %v325_v51, %v632_v37  ;;  %v339_v57 = vadd.s32 4294967272, %v654_v12  ;;  %v335_v58 = vsub.s32 %v332_v53, %v632_v37 }
 0x108   :  { %516 = vpow2.f32 %v279_v9 }
 0x109   :  { %518 = vpow2.f32 %v281_v10  ;;  %v342_v62 = vsub.s32 %v339_v57, %v632_v37 }
 0x10a   :  { %520 = vpow2.f32 %v277_v15 }
 0x10b   :  { %522 = vpow2.f32 %v283_v17 }
 0x10c   :  { %524 = vpow2.f32 %v275_v19 }
 0x10f   :  { %v511_v22 = vpop.eup %510 }
 0x110   :  { %v513_v23 = vpop.eup %512  ;;  %v289_v25 = vsel %vm285_vm1, %v511_v22, 0.0 }
 0x111   :  { %v515_v26 = vpop.eup %514  ;;  %290 = vadd.xlane.f32.xlu1 %v289_v25  ;;  %v286_v30 = vsel %vm285_vm1, %v513_v23, 0.0 }
 0x112   :  { %v517_v31 = vpop.eup %516  ;;  %287 = vadd.xlane.f32.xlu0 %v286_v30  ;;  %v292_v36 = vsel %vm285_vm1, %v515_v26, 0.0 }
 0x113   :  { %v302_v32 = vsel %vm285_vm1, %v517_v31, 0.0  ;;  %v519_v33 = vpop.eup %518 }
 0x114   :  { %v521_v38 = vpop.eup %520  ;;  %v305_v40 = vsel %vm285_vm1, %v519_v33, 0.0 }
 0x115   :  { %303 = vadd.xlane.f32.xlu1 %v302_v32  ;;  %v523_v43 = vpop.eup %522  ;;  %v299_v44 = vsel %vm285_vm1, %v521_v38, 0.0 }
 0x116   :  { %293 = vadd.xlane.f32.xlu0 %v292_v36  ;;  %v525_v45 = vpop.eup %524  ;;  %v308_v46 = vsel %vm295_vm3, %v523_v43, 0.0 }
 0x117   :  { %v296_v48 = vsel %vm295_vm3, %v525_v45, 0.0 }
 0x119   :  { %306 = vadd.xlane.f32.xlu1 %v305_v40 }
 0x11a   :  { %300 = vadd.xlane.f32.xlu0 %v299_v44 }
 0x11d   :  { %309 = vadd.xlane.f32.xlu1 %v308_v46 }
 0x11e   :  { %297 = vadd.xlane.f32.xlu0 %v296_v48 }
 0x121   :  { %430 = vadd.xlane.f32.xlu1 %v429_v49 }
 0x19e   :  { %v291_v50 = vpop.xlane.xlu1 %290 }
 0x19f   :  { %v288_v52 = vpop.xlane.xlu0 %287  ;;  %v329_v60 = vrot.slane %v291_v50, %v328_v55 }
 0x1a0   :  { %v324_v63 = vrot.slane %v288_v52, %v658_v18 }
 0x1a2   :  { %v304_v54 = vpop.xlane.xlu1 %303  ;;  %v331_v8 = vsel %vm330_vm6, %v329_v60, %v324_v63 }
 0x1a3   :  { %v294_v56 = vpop.xlane.xlu0 %293  ;;  %v353_v0 = vrot.slane %v304_v54, %v328_v55 }
 0x1a4   :  { %v336_v3 = vrot.slane %v294_v56, %v335_v58 }
 0x1a6   :  { %v307_v59 = vpop.xlane.xlu1 %306  ;;  %v338_v11 = vsel %vm337_vm7, %v336_v3, %v331_v8 }
 0x1a7   :  { %v301_v61 = vpop.xlane.xlu0 %300  ;;  %v358_v1 = vrot.slane %v307_v59, %v335_v58 }
 0x1a8   :  { %v349_v2 = vrot.slane %v301_v61, %v658_v18 }
 0x1aa   :  { %v354_v4 = vsel %vm330_vm6, %v353_v0, %v349_v2  ;;  %v310_v5 = vpop.xlane.xlu1 %309 }
 0x1ab   :  { %v363_v6 = vrot.slane %v310_v5, %v342_v62  ;;  %v298_v7 = vpop.xlane.xlu0 %297  ;;  %v359_v10 = vsel %vm337_vm7, %v358_v1, %v354_v4 }
 0x1ac   :  { %v343_v9 = vrot.slane %v298_v7, %v342_v62 }
 0x1ad   :  { %v364_v12 = vsel %vm344_vm8, %v363_v6, %v359_v10 }
 0x1ae   :  { %v345_v37 = vsel %vm344_vm8, %v343_v9, %v338_v11  ;;  %v431_v15 = vpop.xlane.xlu1 %430 }
 0x1af   :  { %v366_v13 = vsel %vm365_vm2, %v364_v12, %v345_v37 }
 0x1b0   :  { %v369_v14 = vsel %vm368_vm9, %v366_v13, 0.0 }
 0x1b1   :  { %370 = vadd.xlane.f32.xlu0 %v369_v14 }
 0x23e   :  { %v371_v17 = vpop.xlane.xlu0 %370 }
 0x23f   :  { %v432_v18 = vsub.f32 %v371_v17, %v431_v15 }
 0x241   :  { %v440_v19 = vadd.f32 %v439_v16, %v432_v18 }
 0x243   :  { %442 = vst.msk [vmem:[%s700_s7] sm:$0x3] %vm437_vm5, %v440_v19 }

</bundles_post_ra>
